<compile_context>
chip_gen: v5e
topology: v5e:2x2
jax: 0.10.0
libtpu: 0.0.40
codegen_flags: <defaults>
</compile_context>

<pallas_src>
import functools

import jax
import jax.numpy as jnp
from jax import lax
from jax.experimental import pallas as pl
from jax.experimental.pallas import tpu as pltpu

ALPHA = 0.25
GAMMA = 2.0
REDUCTION = "none"   # matches the module default

_LANE_CANDIDATES = (4096, 2048, 1024, 512, 256, 128)
_MIN_LANES = 128
_SUBLANES = 8
_MIB = 1024 * 1024
_DEFAULT_VMEM_CAPACITY = 64 * _MIB      # conservative default (v7x per-TC VMEM)
_MAX_TARGET_BLOCK_BYTES = 4 * _MIB      # per-array f32 block upper bound
# Per-block VMEM demand multiplier: 3 arrays x 2 pipeline buffers plus a
# generous allowance for Mosaic's materialized f32 element-wise temporaries
# (a multi-MiB block does not fit in the 64-vreg file).
_BLOCK_VMEM_FACTOR = 14
_VMEM_SLACK_BYTES = 2 * _MIB


# --------------------------------------------------------------------------
# Math (pure jnp — used both inside the kernels and for the <128-elem tail).
# --------------------------------------------------------------------------
def _focal_loss_math(x, t, alpha, gamma):
    x = x.astype(jnp.float32)
    t = t.astype(jnp.float32)

    # Stable BCE-with-logits and sigmoid from a single exp(-|x|):
    #   ce = max(x,0) - x*t + log1p(exp(-|x|))
    #   sigmoid(x) = where(x>=0, 1/(1+e), e/(1+e)) with e = exp(-|x|)
    e = jnp.exp(-jnp.abs(x))
    ce = jnp.maximum(x, 0.0) - x * t + jnp.log1p(e)

    inv = 1.0 / (1.0 + e)
    p = jnp.where(x >= 0.0, inv, e * inv)

    p_t = p * t + (1.0 - p) * (1.0 - t)
    q = 1.0 - p_t

    # (1 - p_t)**gamma; small integer gamma -> explicit products (float pow
    # lowers to exp(gamma*log(.)) on the EUP).
    g = float(gamma)
    if g == int(g) and 0 <= int(g) <= 4:
        gi = int(g)
        if gi == 0:
            mod = jnp.ones_like(q)
        else:
            mod = q
            for _ in range(gi - 1):
                mod = mod * q
    else:
        mod = q ** g

    loss = ce * mod
    if alpha >= 0:
        alpha_t = alpha * t + (1.0 - alpha) * (1.0 - t)
        loss = alpha_t * loss
    return loss


# --------------------------------------------------------------------------
# Kernels
# --------------------------------------------------------------------------
def _focal_loss_kernel(x_ref, t_ref, o_ref, *, alpha, gamma):
    loss = _focal_loss_math(x_ref[...], t_ref[...], alpha, gamma)
    o_ref[...] = loss.astype(o_ref.dtype)


def _focal_loss_sum_kernel(x_ref, t_ref, o_ref, acc_ref, *,
                           alpha, gamma, block_rows, valid_rows):
    i = pl.program_id(0)

    @pl.when(i == 0)
    def _init():
        acc_ref[...] = jnp.zeros_like(acc_ref)

    loss = _focal_loss_math(x_ref[...], t_ref[...], alpha, gamma)

    # Only a ragged last block computes on out-of-bounds garbage rows; mask
    # them before the reduction (static no-op when blocks divide evenly).
    if valid_rows % block_rows != 0:
        row = i * block_rows + lax.broadcasted_iota(jnp.int32, loss.shape, 0)
        loss = jnp.where(row < valid_rows, loss, 0.0)

    acc_ref[...] += jnp.sum(loss, keepdims=True)

    @pl.when(i == pl.num_programs(0) - 1)
    def _finalize():
        o_ref[...] = acc_ref[...]


# --------------------------------------------------------------------------
# Tiling / VMEM planning
# --------------------------------------------------------------------------
def _vmem_capacity_bytes():
    try:
        cap = getattr(pltpu.get_tpu_info(), "vmem_capacity_bytes", None)
        if cap:
            return int(cap)
    except Exception:
        pass
    return _DEFAULT_VMEM_CAPACITY


def _choose_lanes(n_main):
    """Widest lane count (multiple of 128) dividing n_main."""
    for lanes in _LANE_CANDIDATES:
        if n_main % lanes == 0:
            return lanes
    return _MIN_LANES  # unreachable: n_main is a multiple of 128


def _choose_block_rows(rows, lanes, itemsize, target_bytes):
    """Rows per block: multiple of 8 (or the full extent), at least 2-4
    pipeline steps for medium/large slabs, evenly dividing rows if possible."""
    if rows < 2 * _SUBLANES:
        return rows                       # single full block (no (8,128) rule)
    rows8 = rows // _SUBLANES             # >= 2
    target8 = max(1, target_bytes // (lanes * itemsize * _SUBLANES))
    min_steps = 4 if rows8 >= 4 else 2    # guarantee the pipeline can overlap
    blk8 = min(target8, max(1, rows8 // min_steps))
    if rows % _SUBLANES == 0:
        # Snap to a divisor of rows so no grid step is a ragged/masked block.
        while blk8 > 1 and rows8 % blk8 != 0:
            blk8 -= 1
    return blk8 * _SUBLANES


def _block_plan(rows, lanes, x_itemsize, t_itemsize, o_itemsize):
    cap = _vmem_capacity_bytes()
    budget = max(16 * _MIB, (cap * 3) // 4)     # leave >= 25% VMEM headroom
    target = min(_MAX_TARGET_BLOCK_BYTES,
                 max(_MIB, (budget - _VMEM_SLACK_BYTES) // _BLOCK_VMEM_FACTOR))
    block_rows = _choose_block_rows(rows, lanes, 4, target)

    io_bytes = block_rows * lanes * (x_itemsize + t_itemsize + o_itemsize)
    f32_bytes = block_rows * lanes * 4
    need = 2 * io_bytes + 8 * f32_bytes + _VMEM_SLACK_BYTES
    vmem_limit = int(min(max(need, 16 * _MIB), budget))
    return block_rows, vmem_limit


# --------------------------------------------------------------------------
# pallas_call wrappers
# --------------------------------------------------------------------------
def _run_elementwise(x2d, t2d, out_dtype, alpha, gamma, block_rows, vmem_limit):
    rows, lanes = x2d.shape
    grid = (pl.cdiv(rows, block_rows),)
    kernel = functools.partial(_focal_loss_kernel, alpha=alpha, gamma=gamma)
    return pl.pallas_call(
        kernel,
        out_shape=jax.ShapeDtypeStruct((rows, lanes), out_dtype),
        grid_spec=pltpu.PrefetchScalarGridSpec(
            num_scalar_prefetch=0,
            grid=grid,
            in_specs=[
                pl.BlockSpec((block_rows, lanes), lambda i: (i, 0)),
                pl.BlockSpec((block_rows, lanes), lambda i: (i, 0)),
            ],
            out_specs=pl.BlockSpec((block_rows, lanes), lambda i: (i, 0)),
        ),
        compiler_params=pltpu.CompilerParams(
            # TODO(synk): on v7x, verify in xprof that both TensorCores are
            # engaged; if not, switch this axis to pltpu.CORE_PARALLEL.
            dimension_semantics=("parallel",),
            vmem_limit_bytes=vmem_limit),
    )(x2d, t2d)


def _run_fused_sum(x2d, t2d, alpha, gamma, block_rows, vmem_limit):
    rows, lanes = x2d.shape
    grid = (pl.cdiv(rows, block_rows),)
    kernel = functools.partial(_focal_loss_sum_kernel, alpha=alpha, gamma=gamma,
                               block_rows=block_rows, valid_rows=rows)
    out = pl.pallas_call(
        kernel,
        out_shape=jax.ShapeDtypeStruct((1, 1), jnp.float32),
        grid_spec=pltpu.PrefetchScalarGridSpec(
            num_scalar_prefetch=0,
            grid=grid,
            in_specs=[
                pl.BlockSpec((block_rows, lanes), lambda i: (i, 0)),
                pl.BlockSpec((block_rows, lanes), lambda i: (i, 0)),
            ],
            out_specs=pl.BlockSpec((1, 1), lambda i: (0, 0)),
            scratch_shapes=[pltpu.VMEM((1, 1), jnp.float32)],
        ),
        compiler_params=pltpu.CompilerParams(
            dimension_semantics=("arbitrary",),   # sequential accumulation
            vmem_limit_bytes=vmem_limit),
    )(x2d, t2d)
    return out[0, 0]


def sigmoid_focal_loss(inputs, targets, alpha=ALPHA, gamma=GAMMA,
                       reduction=REDUCTION):
    if inputs.shape != targets.shape:
        raise ValueError("inputs and targets must have the same shape")
    if reduction not in ("none", "mean", "sum"):
        raise ValueError(f"Invalid Value for arg 'reduction': '{reduction}'")

    orig_shape = inputs.shape
    out_dtype = inputs.dtype
    n = inputs.size

    x_flat = inputs.reshape(-1)
    t_flat = targets.reshape(-1)

    # Kernel covers the lane-aligned prefix; the (<128-elem) tail, if any, is
    # computed with plain jnp — no jnp.pad of the inputs, no output slice.
    n_main = (n // _MIN_LANES) * _MIN_LANES
    tail = n - n_main

    if n_main:
        lanes = _choose_lanes(n_main)
        rows = n_main // lanes
        x_main = x_flat if tail == 0 else x_flat[:n_main]
        t_main = t_flat if tail == 0 else t_flat[:n_main]
        x2d = x_main.reshape(rows, lanes)
        t2d = t_main.reshape(rows, lanes)
        # targets keep their caller dtype (bf16/int8 labels cut HBM traffic);
        # the kernel casts to f32 internally.
        block_rows, vmem_limit = _block_plan(
            rows, lanes,
            jnp.dtype(inputs.dtype).itemsize,
            jnp.dtype(targets.dtype).itemsize,
            jnp.dtype(out_dtype).itemsize)

    if reduction == "none":
        parts = []
        if n_main:
            main2d = _run_elementwise(x2d, t2d, out_dtype, alpha, gamma,
                                      block_rows, vmem_limit)
            parts.append(main2d.reshape(-1))
        if tail:
            tail_loss = _focal_loss_math(x_flat[n_main:], t_flat[n_main:],
                                         alpha, gamma).astype(out_dtype)
            parts.append(tail_loss)
        loss_flat = parts[0] if len(parts) == 1 else jnp.concatenate(parts)
        return loss_flat.reshape(orig_shape)

    # 'sum' / 'mean': fused reduction — the n-element loss never hits HBM.
    total = jnp.zeros((), jnp.float32)
    if n_main:
        total = total + _run_fused_sum(x2d, t2d, alpha, gamma,
                                       block_rows, vmem_limit)
    if tail:
        total = total + jnp.sum(
            _focal_loss_math(x_flat[n_main:], t_flat[n_main:], alpha, gamma))
    if reduction == "mean":
        total = total / n
    return total.astype(out_dtype)


# --------------------------------------------------------------------------
# Reference + self-test
# --------------------------------------------------------------------------
def _reference(inputs, targets, alpha=ALPHA, gamma=GAMMA):
    x = inputs.astype(jnp.float32)
    t = targets.astype(jnp.float32)
    p = jax.nn.sigmoid(x)
    ce = jnp.maximum(x, 0.0) - x * t + jnp.log1p(jnp.exp(-jnp.abs(x)))
    p_t = p * t + (1.0 - p) * (1.0 - t)
    loss = ce * (1.0 - p_t) ** gamma
    if alpha >= 0:
        alpha_t = alpha * t + (1.0 - alpha) * (1.0 - t)
        loss = alpha_t * loss
    return loss


if __name__ == "__main__":
    key = jax.random.PRNGKey(0)
    k1, k2 = jax.random.split(key)

    # Small NCHW-like shape: batch=2, channels=4, spatial=16x16.
    shape = (2, 4, 16, 16)
    inputs = jax.random.normal(k1, shape, dtype=jnp.float32)
    targets = (jax.random.uniform(k2, shape) > 0.5).astype(jnp.float32)

    # reduction='none' (module default)
    loss = sigmoid_focal_loss(inputs, targets)
    jax.block_until_ready(loss)
    ref = _reference(inputs, targets)
    assert loss.shape == shape
    assert jnp.allclose(loss, ref, atol=1e-5, rtol=1e-5), (
        float(jnp.max(jnp.abs(loss - ref))))

    # fused reduction paths
    loss_sum = sigmoid_focal_loss(inputs, targets, reduction="sum")
    loss_mean = sigmoid_focal_loss(inputs, targets, reduction="mean")
    jax.block_until_ready((loss_sum, loss_mean))
    assert jnp.allclose(loss_sum, jnp.sum(ref), rtol=1e-4, atol=1e-3)
    assert jnp.allclose(loss_mean, jnp.mean(ref), rtol=1e-4, atol=1e-5)

    print("KERNEL_OK")
</pallas_src>

<mosaic_0001>
module attributes {stable_mosaic.version = 11 : i64} {
  func.func @_focal_loss_kernel(%arg0: i32, %arg1: memref<1x2048xf32, #tpu.memory_space<vmem>>, %arg2: memref<1x2048xf32, #tpu.memory_space<vmem>>, %arg3: memref<1x2048xf32, #tpu.memory_space<vmem>>) attributes {dimension_semantics = [#tpu.dimension_semantics<parallel>], iteration_bounds = array<i64: 1>, scalar_prefetch = 0 : i64, scratch_operands = 0 : i64, tpu.core_type = #tpu.core_type<tc>, window_params = [{transform_indices = @transform_0, window_bounds = array<i64: 1, 2048>}, {transform_indices = @transform_1, window_bounds = array<i64: 1, 2048>}, {transform_indices = @transform_2, window_bounds = array<i64: 1, 2048>}]} {
    %c0 = arith.constant 0 : index
    %c0_0 = arith.constant 0 : index
    %0 = vector.load %arg1[%c0, %c0_0] : memref<1x2048xf32, #tpu.memory_space<vmem>>, vector<1x2048xf32>
    %c0_1 = arith.constant 0 : index
    %c0_2 = arith.constant 0 : index
    %1 = vector.load %arg2[%c0_1, %c0_2] : memref<1x2048xf32, #tpu.memory_space<vmem>>, vector<1x2048xf32>
    %2 = math.absf %0 : vector<1x2048xf32>
    %cst = arith.constant 0.000000e+00 : f32
    %3 = vector.broadcast %cst : f32 to vector<1x2048xf32>
    %4 = arith.subf %3, %2 : vector<1x2048xf32>
    %5 = math.exp %4 : vector<1x2048xf32>
    %cst_3 = arith.constant 0.000000e+00 : f32
    %6 = vector.broadcast %cst_3 : f32 to vector<1x2048xf32>
    %7 = arith.maximumf %0, %6 : vector<1x2048xf32>
    %8 = arith.mulf %0, %1 : vector<1x2048xf32>
    %9 = arith.subf %7, %8 : vector<1x2048xf32>
    %10 = math.log1p %5 : vector<1x2048xf32>
    %11 = arith.addf %9, %10 : vector<1x2048xf32>
    %cst_4 = arith.constant 1.000000e+00 : f32
    %12 = vector.broadcast %cst_4 : f32 to vector<1x2048xf32>
    %13 = arith.addf %12, %5 : vector<1x2048xf32>
    %cst_5 = arith.constant 1.000000e+00 : f32
    %14 = vector.broadcast %cst_5 : f32 to vector<1x2048xf32>
    %15 = arith.divf %14, %13 : vector<1x2048xf32>
    %cst_6 = arith.constant 0.000000e+00 : f32
    %16 = vector.broadcast %cst_6 : f32 to vector<1x2048xf32>
    %17 = arith.cmpf oge, %0, %16 : vector<1x2048xf32>
    %18 = arith.mulf %5, %15 : vector<1x2048xf32>
    %19 = arith.select %17, %15, %18 : vector<1x2048xi1>, vector<1x2048xf32>
    %20 = arith.mulf %19, %1 : vector<1x2048xf32>
    %cst_7 = arith.constant 1.000000e+00 : f32
    %21 = vector.broadcast %cst_7 : f32 to vector<1x2048xf32>
    %22 = arith.subf %21, %19 : vector<1x2048xf32>
    %cst_8 = arith.constant 1.000000e+00 : f32
    %23 = vector.broadcast %cst_8 : f32 to vector<1x2048xf32>
    %24 = arith.subf %23, %1 : vector<1x2048xf32>
    %25 = arith.mulf %22, %24 : vector<1x2048xf32>
    %26 = arith.addf %20, %25 : vector<1x2048xf32>
    %cst_9 = arith.constant 1.000000e+00 : f32
    %27 = vector.broadcast %cst_9 : f32 to vector<1x2048xf32>
    %28 = arith.subf %27, %26 : vector<1x2048xf32>
    %29 = arith.mulf %28, %28 : vector<1x2048xf32>
    %30 = arith.mulf %11, %29 : vector<1x2048xf32>
    %cst_10 = arith.constant 2.500000e-01 : f32
    %31 = vector.broadcast %cst_10 : f32 to vector<1x2048xf32>
    %32 = arith.mulf %31, %1 : vector<1x2048xf32>
    %cst_11 = arith.constant 1.000000e+00 : f32
    %33 = vector.broadcast %cst_11 : f32 to vector<1x2048xf32>
    %34 = arith.subf %33, %1 : vector<1x2048xf32>
    %cst_12 = arith.constant 7.500000e-01 : f32
    %35 = vector.broadcast %cst_12 : f32 to vector<1x2048xf32>
    %36 = arith.mulf %35, %34 : vector<1x2048xf32>
    %37 = arith.addf %32, %36 : vector<1x2048xf32>
    %38 = arith.mulf %37, %30 : vector<1x2048xf32>
    %c0_13 = arith.constant 0 : index
    %c0_14 = arith.constant 0 : index
    %39 = vector.load %arg3[%c0_13, %c0_14] : memref<1x2048xf32, #tpu.memory_space<vmem>>, vector<1x2048xf32>
    tpu.vector_store %arg3[%c0_13, %c0_14], %38 {strides = array<i32>} : memref<1x2048xf32, #tpu.memory_space<vmem>>, vector<1x2048xf32>,
    return
  }
  func.func @transform_0(%arg0: i32) -> (i32, i32) {
    %c0_i32 = arith.constant 0 : i32
    %c0_i32_0 = arith.constant 0 : i32
    return %arg0, %c0_i32 : i32, i32
  }
  func.func @transform_1(%arg0: i32) -> (i32, i32) {
    %c0_i32 = arith.constant 0 : i32
    %c0_i32_0 = arith.constant 0 : i32
    return %arg0, %c0_i32 : i32, i32
  }
  func.func @transform_2(%arg0: i32) -> (i32, i32) {
    %c0_i32 = arith.constant 0 : i32
    %c0_i32_0 = arith.constant 0 : i32
    return %arg0, %c0_i32 : i32, i32
  }
}

</mosaic_0001>

<bundles_post_ra>
// kernel: tpu_custom_call.1
= control target key start
LH: loop header
LB: loop body
LE: loop exit
PB: predicated region body
PF: predicated region fallthrough
CT: control target
= control target key end

     0   :  { %7 = vsyncpa [#allocation3], 0  ;;  %s326_s0 = inlined_call_operand.hbm [shape: f32[1,2048], index: 0, kind: input, shape index: {}]   ;;  %s327_s1 = inlined_call_operand.hbm [shape: f32[1,2048], index: 1, kind: input, shape index: {}]   ;;  %s328_s2 = inlined_call_operand.hbm [shape: f32[1,2048], index: 2, kind: output, shape index: {}]  }
   0x1   :  { %8 = vsyncpa [#allocation6], 0 }
   0x2   :  { %9 = vsyncpa [#allocation4], 0  ;;  %s15_s11 = sshll.u32 %s326_s0, 4  ;;  %s253_s12 = smov [#allocation2]   ;;  %s16_s11 = int_to_ptr.hbm [resolvable:$true] %s15_s11 }
   0x3   :  { %s17_s13 = sshll.u32 %s253_s12, 4  ;;  %s26_s16 = sshll.u32 %s327_s1, 4  ;;  %s18_s13 = int_to_ptr.vmem [resolvable:$true] %s17_s13  ;;  %s27_s16 = int_to_ptr.hbm [resolvable:$true] %s26_s16 }
   0x4   :  { %20 = dma.hbm_to_vmem [thread:$0]  %s16_s11, 256, %s18_s13, [#allocation3]  }
   0x5   :  { %s254_s17 = smov [#allocation5]  }
   0x6   :  { %s28_s18 = sshll.u32 %s254_s17, 4  ;;  %s29_s18 = int_to_ptr.vmem [resolvable:$true] %s28_s18 }
   0x7   :  { %31 = dma.hbm_to_vmem [thread:$0]  %s27_s16, 256, %s29_s18, [#allocation6]  }
   0x8   :  { %247 = dma.done.wait [#allocation3], 256  }
   0x9   :  { %248 = vsyncadd [#allocation3], 4294967040 }
   0xa   :  { %249 = dma.done.wait [#allocation6], 256  }
   0xb   :  { %250 = vsyncadd [#allocation6], 4294967040  ;;  %v277_v0 = vld [vmem:[#allocation2] sm:$0xff]  ;;  %v279_v1 = vld [vmem:[#allocation2 + $0x8] sm:$0xff]  ;;  %s255_s0 = smov [#allocation7]   ;;  %s149_s21 = sshll.u32 %s328_s2, 4  ;;  %s150_s21 = int_to_ptr.hbm [resolvable:$true] %s149_s21 }
   0xc   :  { %v44_v2 = vand.u32 2147483647, %v277_v0  ;;  %v45_v3 = vand.u32 2147483647, %v279_v1  ;;  %v42_v26 = vld [vmem:[#allocation5] sm:$0xff]  ;;  %v52_v30 = vmax.f32 %v277_v0, 0.0 }
   0xd   :  { %v54_v31 = vmul.f32 %v42_v26, %v277_v0  ;;  %vm110_vm8 = vcmp.ge.f32.partialorder %v277_v0, 0.0  ;;  %v120_v40 = vsub.f32 1.0, %v42_v26  ;;  %v43_v42 = vld [vmem:[#allocation5 + $0x8] sm:$0xff]  ;;  %vm111_vm9 = vcmp.ge.f32.partialorder %v279_v1, 0.0  ;;  %s147_s1 = sshll.u32 %s255_s0, 4  ;;  %s148_s1 = int_to_ptr.vmem [resolvable:$true] %s147_s1 }
   0xe   :  { %v46_v4 = vsub.f32 0.0, %v44_v2  ;;  %v47_v5 = vsub.f32 0.0, %v45_v3  ;;  %v53_v46 = vmax.f32 %v279_v1, 0.0  ;;  %v55_v47 = vmul.f32 %v43_v42, %v279_v1 }
   0xf   :  { %v121_v57 = vsub.f32 1.0, %v43_v42  ;;  %v56_v58 = vsub.f32 %v52_v30, %v54_v31  ;;  %v133_v1 = vmul.f32 0.25, %v43_v42 }
  0x10   :  { %v48_v6 = vmul.f32 1.442695, %v46_v4  ;;  %v50_v7 = vmul.f32 1.442695, %v47_v5  ;;  %v57_v4 = vsub.f32 %v53_v46, %v55_v47 }
  0x12   :  { %163 = vpow2.f32 %v48_v6  ;;  %v132_v6 = vmul.f32 0.25, %v42_v26 }
  0x13   :  { %165 = vpow2.f32 %v50_v7  ;;  %v134_v7 = vmul.f32 0.75, %v120_v40 }
  0x18   :  { %v164_v8 = vpop.eup %163 }
  0x19   :  { %v283_v9 = vpop.eup %165  ;;  %v58_v10 = vadd.f32 1.0, %v164_v8  ;;  %v61_v19 = vmul.f32 -0.5, %v164_v8  ;;  %v64_v38 = vand.u32 2147483647, %v164_v8 }
  0x1a   :  { %v67_v11 = vadd.f32 1.0, %v283_v9  ;;  %v70_v28 = vmul.f32 -0.5, %v283_v9  ;;  %v73_v48 = vand.u32 2147483647, %v283_v9 }
  0x1b   :  { %167 = vrcp.f32 %v58_v10  ;;  %vm85_vm0 = vweird.f32 %v58_v10  ;;  %v91_v15 = vand.u32 2147483648, %v58_v10  ;;  %v89_v17 = vand.u32 2147483647, %v58_v10 }
  0x1c   :  { %169 = vrcp.f32 %v67_v11  ;;  %vm100_vm2 = vweird.f32 %v67_v11  ;;  %v106_v20 = vand.u32 2147483648, %v67_v11  ;;  %v104_v23 = vand.u32 2147483647, %v67_v11 }
  0x1d   :  { %171 = vlog2.f32 %v58_v10  ;;  %v92_v25 = vor.u32 1.1754944e-38, %v91_v15  ;;  %vm90_vm5 = vcmp.eq.f32.partialorder %v89_v17, 8.507059e+37  ;;  %v62_v34 = vadd.f32 1.0, %v61_v19 }
  0x1e   :  { %173 = vlog2.f32 %v67_v11  ;;  %v107_v33 = vor.u32 1.1754944e-38, %v106_v20  ;;  %vm105_vm7 = vcmp.eq.f32.partialorder %v104_v23, 8.507059e+37  ;;  %v71_v43 = vadd.f32 1.0, %v70_v28 }
  0x1f   :  { %v63_v51 = vmul.f32 %v164_v8, %v62_v34  ;;  %vm308_vm10 = vcmp.lt.f32.partialorder %v64_v38, 0.0004427343  ;;  %vm315_vm11 = vcmp.lt.f32.partialorder %v73_v48, 0.0004427343  ;;  %v136_v15 = vadd.f32 %v134_v7, %v132_v6 }
  0x20   :  { %v72_v60 = vmul.f32 %v283_v9, %v71_v43 }
  0x21   :  { %v168_v12 = vpop.eup %167 }
  0x22   :  { %v81_v13 = vmul.f32 %v168_v12, %v58_v10  ;;  %v170_v14 = vpop.eup %169  ;;  %vm86_vm1 = vweird.f32 %v168_v12 }
  0x23   :  { %v96_v18 = vmul.f32 %v170_v14, %v67_v11  ;;  %vm101_vm3 = vweird.f32 %v170_v14  ;;  %vm286_vm4 = vmor %vm85_vm0, %vm86_vm1  ;;  %v172_v37 = vpop.eup %171 }
  0x24   :  { %v82_v16 = vsub.f32 1.0, %v81_v13  ;;  %vm294_vm6 = vmor %vm100_vm2, %vm101_vm3  ;;  %v174_v45 = vpop.eup %173  ;;  %v60_v50 = vmul.f32 0.6931472, %v172_v37  ;;  %v135_v13 = vmul.f32 0.75, %v121_v57 }
  0x25   :  { %v97_v22 = vsub.f32 1.0, %v96_v18  ;;  %v69_v59 = vmul.f32 0.6931472, %v174_v45 }
  0x26   :  { %v83_v21 = vmul.f32 %v168_v12, %v82_v16  ;;  %v66_v3 = vsel %vm308_vm10, %v63_v51, %v60_v50  ;;  %v137_v20 = vadd.f32 %v135_v13, %v133_v1 }
  0x27   :  { %v98_v29 = vmul.f32 %v170_v14, %v97_v22  ;;  %v76_v10 = vadd.f32 %v66_v3, %v56_v58 }
  0x28   :  { %v84_v27 = vadd.f32 %v168_v12, %v83_v21 }
  0x29   :  { %v99_v36 = vadd.f32 %v170_v14, %v98_v29 }
  0x2a   :  { %v88_v35 = vsel %vm286_vm4, %v168_v12, %v84_v27 }
  0x2b   :  { %v93_v39 = vsel %vm90_vm5, %v92_v25, %v88_v35  ;;  %v103_v44 = vsel %vm294_vm6, %v170_v14, %v99_v36 }
  0x2c   :  { %v112_v41 = vmul.f32 %v164_v8, %v93_v39  ;;  %v108_v49 = vsel %vm105_vm7, %v107_v33, %v103_v44 }
  0x2d   :  { %v113_v53 = vmul.f32 %v283_v9, %v108_v49  ;;  %v75_v9 = vsel %vm315_vm11, %v72_v60, %v69_v59 }
  0x2e   :  { %v114_v52 = vsel %vm110_vm8, %v93_v39, %v112_v41  ;;  %v77_v16 = vadd.f32 %v75_v9, %v57_v4 }
  0x2f   :  { %v116_v55 = vmul.f32 %v114_v52, %v42_v26  ;;  %v118_v56 = vsub.f32 1.0, %v114_v52  ;;  %v115_v61 = vsel %vm111_vm9, %v108_v49, %v113_v53 }
  0x30   :  { %v117_v0 = vmul.f32 %v115_v61, %v43_v42  ;;  %v119_v2 = vsub.f32 1.0, %v115_v61 }
  0x31   :  { %v122_v62 = vmul.f32 %v120_v40, %v118_v56 }
  0x32   :  { %v123_v8 = vmul.f32 %v121_v57, %v119_v2 }
  0x33   :  { %v124_v5 = vadd.f32 %v122_v62, %v116_v55 }
  0x34   :  { %v125_v12 = vadd.f32 %v123_v8, %v117_v0 }
  0x35   :  { %v126_v11 = vsub.f32 1.0, %v124_v5 }
  0x36   :  { %v127_v17 = vsub.f32 1.0, %v125_v12 }
  0x37   :  { %v128_v14 = vmul.f32 %v126_v11, %v126_v11 }
  0x38   :  { %v129_v19 = vmul.f32 %v127_v17, %v127_v17 }
  0x39   :  { %v130_v18 = vmul.f32 %v128_v14, %v76_v10 }
  0x3a   :  { %v131_v22 = vmul.f32 %v129_v19, %v77_v16 }
  0x3b   :  { %v138_v21 = vmul.f32 %v136_v15, %v130_v18 }
  0x3c   :  { %v139_v23 = vmul.f32 %v137_v20, %v131_v22 }
  0x3d   :  { %140 = vst [vmem:[#allocation7] sm:$0xff] %v138_v21 }
  0x3e   :  { %141 = vst [vmem:[#allocation7 + $0x8] sm:$0xff] %v139_v23 }
  0x3f   :  { %152 = dma.vmem_to_hbm [thread:$0]  %s148_s1, 256, %s150_s21, [#allocation4]  }
  0x40   :  { %251 = dma.done.wait [#allocation4], 256  }
  0x41   :  { %252 = vsyncadd [#allocation4], 4294967040 }
  0x42   :  { %157 = vsyncpa [#allocation3], 1 }
  0x43   :  { %158 = vsyncpa [#allocation6], 1 }
  0x44   :  { %159 = vsyncpa [#allocation4], 1 }

</bundles_post_ra>
